<compile_context>
chip_gen: v5e
topology: v5e:2x2
jax: 0.10.0
libtpu: 0.0.40
codegen_flags: <defaults>
</compile_context>

<pallas_src>
import functools

import jax
import jax.numpy as jnp
from jax.experimental import pallas as pl
from jax.experimental.pallas import tpu as pltpu


def _round_up(x: int, m: int) -> int:
    return ((x + m - 1) // m) * m


def _embed_band_kernel(t_ref, emb_ref, out_ref, *, col_i: int):
    # t_ref:   (TM, F)      tile of flattened input rows
    # emb_ref: (n, E)       embedding table (resident across grid steps)
    # out_ref: (TM, F + E)  concatenated output tile
    t = t_ref[...]                                   # (TM, F)
    table = emb_ref[...]                             # (n, E)
    tm = t.shape[0]
    n = table.shape[0]

    # Band index: column `col_i` of t, truncated to int (matches .to(torch.int)).
    idx = t[:, col_i:col_i + 1].astype(jnp.int32)    # (TM, 1)

    # Gather via one-hot matmul (n is tiny; this is the MXU-friendly gather).
    iota = jax.lax.broadcasted_iota(jnp.int32, (tm, n), 1)      # (TM, n)
    onehot = (idx == iota).astype(table.dtype)                  # (TM, n)
    emb = jnp.dot(onehot, table, preferred_element_type=jnp.float32)  # (TM, E)

    # Single full-tile store: [t | embedding(t[..., i])]
    out_ref[...] = jnp.concatenate([t, emb.astype(t.dtype)], axis=-1)


def embed_band(t: jax.Array, embedding_weight: jax.Array, i: int = 2,
               tm_max: int = 512) -> jax.Array:
    """Pallas equivalent of EmbedBand.forward.

    t:                 array of shape (..., F), F > i
    embedding_weight:  (n, embedding_dim) table
    returns:           array of shape (..., F + embedding_dim), dtype of t
    """
    *lead, f = t.shape
    n, e = embedding_weight.shape
    assert 0 <= i < f, "band column index out of range"

    m = 1
    for d in lead:
        m *= d

    table = embedding_weight.astype(t.dtype)
    t2d = t.reshape(m, f)

    # Row-tile size: multiple of the dtype's sublane packing (8 for f32,
    # 16 for bf16, ...), capped at tm_max; pad M to a multiple of it.
    itemsize = jnp.dtype(t.dtype).itemsize
    row_mult = max(8, 32 // itemsize)
    tm = min(_round_up(tm_max, row_mult), _round_up(m, row_mult))
    m_pad = _round_up(m, tm)
    if m_pad != m:
        # Padded rows index band 0 (harmless); they are sliced off below.
        t2d = jnp.pad(t2d, ((0, m_pad - m), (0, 0)))

    grid = (m_pad // tm,)

    out2d = pl.pallas_call(
        functools.partial(_embed_band_kernel, col_i=i),
        out_shape=jax.ShapeDtypeStruct((m_pad, f + e), t.dtype),
        grid=grid,
        in_specs=[
            pl.BlockSpec((tm, f), lambda g: (g, 0)),     # tiled rows of t
            pl.BlockSpec((n, e), lambda g: (0, 0)),      # table resident in VMEM
        ],
        out_specs=pl.BlockSpec((tm, f + e), lambda g: (g, 0)),
        compiler_params=pltpu.CompilerParams(
            dimension_semantics=("parallel",),           # megacore split on v7x
        ),
    )(t2d, table)

    out2d = out2d[:m]
    return out2d.reshape(*lead, f + e)


if __name__ == "__main__":
    key = jax.random.PRNGKey(0)
    k_t, k_band, k_w = jax.random.split(key, 3)

    # Small shapes consistent with the module: batch=2, seq=8, per-token
    # features F=8 (band id stored in column i=2), embedding n=4, dim=32.
    B, S, F = 2, 8, 8
    N_BANDS, E, I = 4, 32, 2

    t = jax.random.normal(k_t, (B, S, F), dtype=jnp.float32)
    band = jax.random.randint(k_band, (B, S), 0, N_BANDS).astype(jnp.float32)
    t = t.at[..., I].set(band)  # column i holds integer-valued band ids
    emb_weight = jax.random.normal(k_w, (N_BANDS, E), dtype=jnp.float32)

    out = embed_band(t, emb_weight, i=I)
    out = jax.block_until_ready(out)

    # Pure-JAX reference: torch.cat((t, embedding(t[..., i].int())), -1)
    idx = t[..., I].astype(jnp.int32)
    ref = jnp.concatenate([t, emb_weight[idx]], axis=-1)

    assert out.shape == (B, S, F + E)
    assert jnp.allclose(out, ref, atol=1e-6), "mismatch vs reference"
    print("KERNEL_OK")
</pallas_src>

<mosaic_0001>
module attributes {stable_mosaic.version = 11 : i64} {
  func.func @_embed_band_kernel(%arg0: i32, %arg1: memref<16x8xf32, #tpu.memory_space<vmem>>, %arg2: memref<4x32xf32, #tpu.memory_space<vmem>>, %arg3: memref<16x40xf32, #tpu.memory_space<vmem>>) attributes {dimension_semantics = [#tpu.dimension_semantics<parallel>], iteration_bounds = array<i64: 1>, scalar_prefetch = 0 : i64, scratch_operands = 0 : i64, tpu.core_type = #tpu.core_type<tc>, window_params = [{transform_indices = @transform_0, window_bounds = array<i64: 16, 8>}, {pipeline_mode = #tpu.pipeline_mode<synchronous>, transform_indices = @transform_1, window_bounds = array<i64: 4, 32>}, {transform_indices = @transform_2, window_bounds = array<i64: 16, 40>}]} {
    %c0 = arith.constant 0 : index
    %c0_0 = arith.constant 0 : index
    %0 = vector.load %arg1[%c0, %c0_0] : memref<16x8xf32, #tpu.memory_space<vmem>>, vector<16x8xf32>
    %c0_1 = arith.constant 0 : index
    %c0_2 = arith.constant 0 : index
    %1 = vector.load %arg2[%c0_1, %c0_2] : memref<4x32xf32, #tpu.memory_space<vmem>>, vector<4x32xf32>
    %2 = vector.extract_strided_slice %0 {offsets = [0, 2], sizes = [16, 1], strides = [1, 1]} : vector<16x8xf32> to vector<16x1xf32>
    %3 = arith.fptosi %2 : vector<16x1xf32> to vector<16x1xi32>
    %4 = tpu.iota {dimensions = array<i32: 1>} : vector<16x4xi32>
    %5 = vector.broadcast %3 : vector<16x1xi32> to vector<16x4xi32>
    %6 = arith.cmpi eq, %5, %4 : vector<16x4xi32>
    %7 = arith.extui %6 : vector<16x4xi1> to vector<16x4xi32>
    %8 = arith.sitofp %7 : vector<16x4xi32> to vector<16x4xf32>
    %cst = arith.constant dense<0.000000e+00> : vector<16x32xf32>
    %9 = tpu.matmul %8, %1, %cst {dimension_numbers = #tpu.dot_dimension_numbers<[1], [0], [0], [1], [0, 0, 1, 1], [], []>} : vector<16x4xf32>, vector<4x32xf32>, vector<16x32xf32> -> vector<16x32xf32>
    %10 = tpu.concatenate %0, %9 in 1 : vector<16x8xf32>, vector<16x32xf32> -> vector<16x40xf32>
    %c0_3 = arith.constant 0 : index
    %c0_4 = arith.constant 0 : index
    %11 = vector.load %arg3[%c0_3, %c0_4] : memref<16x40xf32, #tpu.memory_space<vmem>>, vector<16x40xf32>
    tpu.vector_store %arg3[%c0_3, %c0_4], %10 {strides = array<i32>} : memref<16x40xf32, #tpu.memory_space<vmem>>, vector<16x40xf32>,
    return
  }
  func.func @transform_0(%arg0: i32) -> (i32, i32) {
    %c0_i32 = arith.constant 0 : i32
    %c0_i32_0 = arith.constant 0 : i32
    return %arg0, %c0_i32 : i32, i32
  }
  func.func @transform_1(%arg0: i32) -> (i32, i32) {
    %c0_i32 = arith.constant 0 : i32
    %c0_i32_0 = arith.constant 0 : i32
    %c0_i32_1 = arith.constant 0 : i32
    return %c0_i32, %c0_i32_0 : i32, i32
  }
  func.func @transform_2(%arg0: i32) -> (i32, i32) {
    %c0_i32 = arith.constant 0 : i32
    %c0_i32_0 = arith.constant 0 : i32
    return %arg0, %c0_i32 : i32, i32
  }
}

</mosaic_0001>

<bundles_post_ra>
// kernel: tpu_custom_call.1
= control target key start
LH: loop header
LB: loop body
LE: loop exit
PB: predicated region body
PF: predicated region fallthrough
CT: control target
= control target key end

     0   :  { %s177_s0 = inlined_call_operand.vmem [shape: f32[16,8], index: 0, kind: input, shape index: {}]   ;;  %s178_s1 = inlined_call_operand.vmem [shape: f32[4,32], index: 1, kind: input, shape index: {}]   ;;  %s179_s2 = inlined_call_operand.hbm [shape: f32[16,40], index: 2, kind: output, shape index: {}]  }
   0x1   :  { %v12_v0 = vld [vmem:[%s177_s0] sm:$0xff]  ;;  %v13_v1 = vld [vmem:[%s177_s0 + $0x8] sm:$0xff] }
   0x2   :  { %7 = vsyncpa [#allocation3], 0  ;;  %v145_v2 = vmov 2   ;;  %vm103_vm0 = vcmp.lt.s32.totalorder %v12_v0, 0  ;;  %v104_v3 = vceil.f32 %v12_v0  ;;  %v105_v4 = vfloor.f32 %v12_v0  ;;  %v14_v11 = vld [vmem:[%s178_s1] sm:$0xf] }
   0x3   :  { %118 = vset.pattern.permute.xlu0 %v145_v2  ;;  %v109_v6 = vceil.f32 %v13_v1  ;;  %v110_v7 = vfloor.f32 %v13_v1  ;;  %vm108_vm1 = vcmp.lt.s32.totalorder %v13_v1, 0  ;;  %vm38_vm2 = vcmask 1043456   ;;  %s147_s0 = smov 8   ;;  %s148_s1 = smov [#allocation2]  }
   0x4   :  { %v106_v5 = vsel %vm103_vm0, %v104_v3, %v105_v4  ;;  %99 = vmatpush.msk.msra.mxu0 %vm38_vm2, %v14_v11  ;;  %102 = vmatpush.msk.msra.mxu1 %vm38_vm2, %v14_v11  ;;  %v17_v12 = vlaneseq  ;;  %vm31_vm3 = vcmask 31744   ;;  %v146_v15 = vmov 0.0   ;;  %s83_s15 = sshll.u32 %s148_s1, 4  ;;  %s85_s18 = sshll.u32 %s179_s2, 4  ;;  %s84_s15 = int_to_ptr.vmem [resolvable:$true] %s83_s15  ;;  %s86_s18 = int_to_ptr.hbm [resolvable:$true] %s85_s18 }
   0x5   :  { %v107_v8 = vcvt.f32.s32 %v106_v5  ;;  %v111_v9 = vsel %vm108_vm1, %v109_v6, %v110_v7  ;;  %vm73_vm6 = vcmask 64512   ;;  %vm76_vm7 = vcmask 326656   ;;  %s149_s19 = smov 128  }
   0x6   :  { %v112_v10 = vcvt.f32.s32 %v111_v9  ;;  %v18_v13 = vand.u32 127, %v17_v12 }
   0x7   :  { %20 = vperm.xlu0 %118, %v107_v8  }
   0xf   :  { %23 = vperm.xlu0 %118, %v112_v10  }
  0x79   :  { %v21_v14 = vpop.permute.xlu0 %20 }
  0x7a   :  { %vm25_vm4 = vcmp.eq.s32.totalorder %v21_v14, %v18_v13 }
  0x7b   :  { %v97_v16 = vsel %vm25_vm4, 1.0, %v146_v15 }
  0x7c   :  { %100 = vmatmul.msk.f32.vlgmr.msra.gmra.mxu0 %vm31_vm3, %v97_v16 }
  0x81   :  { %v24_v17 = vpop.permute.xlu0 %23 }
  0x82   :  { %vm26_vm5 = vcmp.eq.s32.totalorder %v24_v17, %v18_v13 }
  0x83   :  { %v98_v18 = vsel %vm26_vm5, 1.0, %v146_v15 }
  0x84   :  { %101 = vmatmul.msk.f32.vlgmr.msra.gmra.mxu1 %vm31_vm3, %v98_v18 }
  0xf9   :  { %v59_v19 = vpop.f32.mrf.mxu0 }
  0xfa   :  { %67 = vrot.lane.b32.xlu1 %v59_v19, %s147_s0 }
 0x101   :  { %v62_v20 = vpop.f32.mrf.mxu1 }
 0x102   :  { %69 = vrot.lane.b32.xlu1 %v62_v20, %s147_s0 }
 0x16c   :  { %v68_v21 = vpop.permute.xlu1 %67 }
 0x16d   :  { %v74_v22 = vsel %vm73_vm6, %v12_v0, %v68_v21 }
 0x16e   :  { %77 = vst.msk [vmem:[#allocation2] sm:$0xff] %vm76_vm7, %v74_v22 }
 0x174   :  { %v70_v23 = vpop.permute.xlu1 %69 }
 0x175   :  { %v75_v24 = vsel %vm73_vm6, %v13_v1, %v70_v23 }
 0x176   :  { %78 = vst.msk [vmem:[#allocation2 + $0x8] sm:$0xff] %vm76_vm7, %v75_v24 }
 0x177   :  { %91 = dma.vmem_to_hbm [thread:$0]  %s84_s15, 256, %s86_s18, [#allocation3], %s149_s19, %s149_s19, %s147_s0  }
 0x178   :  { %143 = dma.done.wait [#allocation3], 256  }
 0x179   :  { %144 = vsyncadd [#allocation3], 4294967040 }
 0x17a   :  { %96 = vsyncpa [#allocation3], 1 }

</bundles_post_ra>
